<compile_context>
chip_gen: v7x
topology: tpu7x:2x2x1
jax: 0.10.0
libtpu: 0.0.40
codegen_flags: <defaults>
</compile_context>

<pallas_src>
import functools

import numpy as np
import jax
import jax.numpy as jnp
from jax import lax
from jax.experimental import pallas as pl
from jax.experimental.pallas import tpu as pltpu


# ----------------------------- Pallas kernel -----------------------------

def _spectral_gn_kernel(x_ref, gamma_ref, beta_ref, gmat_ref, o_ref, *, eps):
    # x_ref:     (C, S, HW)  one batch sample, HW on the lane dim
    # gamma_ref: (C, 1)      shared affine scale
    # beta_ref:  (C, 1)      shared affine shift
    # gmat_ref:  (C, C)      group-averaging matrix: 1/(cpg*HW) within a group, else 0
    x = x_ref[...].astype(jnp.float32)                        # (C, S, HW)

    # per-(channel, spectral) spatial sums (lane reductions)
    s1 = jnp.sum(x, axis=-1)                                  # (C, S)
    s2 = jnp.sum(x * x, axis=-1)                              # (C, S)

    # group stats: aggregate over channels of a group and broadcast back per channel
    mean = jnp.dot(gmat_ref[...], s1, preferred_element_type=jnp.float32)  # (C, S)
    ex2 = jnp.dot(gmat_ref[...], s2, preferred_element_type=jnp.float32)   # (C, S)
    var = jnp.maximum(ex2 - mean * mean, 0.0)                 # clamp one-pass variance
    inv = lax.rsqrt(var + eps)                                # (C, S)

    scale = inv * gamma_ref[...]                              # (C, S)
    shift = beta_ref[...] - mean * scale                      # (C, S)

    o_ref[...] = (x * scale[:, :, None] + shift[:, :, None]).astype(o_ref.dtype)


# ----------------------------- wrapper -----------------------------

def spectral_normalize(x, gamma, beta, *, num_groups=None, eps=1e-5):
    """Spectral_Normalize forward (normalize_type='g').

    x: (N, C, S, H, W)  ->  (N, C, S, H, W)
    gamma, beta: (C,)   shared GroupNorm affine parameters.
    """
    N, C, S, H, W = x.shape
    HW = H * W
    if num_groups is None:
        num_groups = 8 if C >= 8 else 1          # matches the torch module
    assert C % num_groups == 0
    cpg = C // num_groups

    # compile-time group-averaging matrix
    gmat = jnp.asarray(
        np.kron(np.eye(num_groups, dtype=np.float32),
                np.ones((cpg, cpg), np.float32)) / float(cpg * HW))

    x4 = x.reshape(N, C, S, HW)                  # merging trailing dims is layout-free

    out = pl.pallas_call(
        functools.partial(_spectral_gn_kernel, eps=eps),
        out_shape=jax.ShapeDtypeStruct((N, C, S, HW), x.dtype),
        grid_spec=pltpu.PrefetchScalarGridSpec(
            num_scalar_prefetch=0,
            grid=(N,),
            in_specs=[
                pl.BlockSpec((None, C, S, HW), lambda n: (n, 0, 0, 0)),
                pl.BlockSpec((C, 1), lambda n: (0, 0)),
                pl.BlockSpec((C, 1), lambda n: (0, 0)),
                pl.BlockSpec((C, C), lambda n: (0, 0)),
            ],
            out_specs=pl.BlockSpec((None, C, S, HW), lambda n: (n, 0, 0, 0)),
        ),
        compiler_params=pltpu.CompilerParams(
            dimension_semantics=("parallel",)),
    )(x4,
      gamma.reshape(C, 1).astype(jnp.float32),
      beta.reshape(C, 1).astype(jnp.float32),
      gmat)

    return out.reshape(N, C, S, H, W)


# ----------------------------- pure-JAX reference -----------------------------

def reference_forward(x, gamma, beta, num_groups, eps=1e-5):
    N, C, S, H, W = x.shape
    G = num_groups
    xg = x.reshape(N, G, C // G, S, H, W)
    mean = xg.mean(axis=(2, 4, 5), keepdims=True)
    var = ((xg - mean) ** 2).mean(axis=(2, 4, 5), keepdims=True)
    xn = ((xg - mean) / jnp.sqrt(var + eps)).reshape(N, C, S, H, W)
    return xn * gamma[None, :, None, None, None] + beta[None, :, None, None, None]


# ----------------------------- main -----------------------------

if __name__ == "__main__":
    # 5D input (N, C=num_features, S=num_spectral, H, W)
    N, C, S, H, W = 2, 16, 4, 16, 16            # num_features=16 -> num_groups=8
    EPS = 1e-5

    key = jax.random.PRNGKey(0)
    kx, kg, kb = jax.random.split(key, 3)
    x = jax.random.normal(kx, (N, C, S, H, W), jnp.float32)
    gamma = 1.0 + 0.1 * jax.random.normal(kg, (C,), jnp.float32)
    beta = 0.1 * jax.random.normal(kb, (C,), jnp.float32)

    fwd = jax.jit(functools.partial(spectral_normalize, eps=EPS))
    out = jax.block_until_ready(fwd(x, gamma, beta))
    assert out.shape == x.shape, out.shape

    ref = reference_forward(x, gamma, beta, num_groups=8, eps=EPS)
    np.testing.assert_allclose(np.asarray(out), np.asarray(ref), rtol=1e-4, atol=1e-4)
    print("KERNEL_OK")
</pallas_src>

<mosaic_0001>
module attributes {stable_mosaic.version = 11 : i64} {
  func.func @_spectral_gn_kernel(%arg0: i32, %arg1: memref<1x16x4x256xf32, #tpu.memory_space<vmem>>, %arg2: memref<16x1xf32, #tpu.memory_space<vmem>>, %arg3: memref<16x1xf32, #tpu.memory_space<vmem>>, %arg4: memref<16x16xf32, #tpu.memory_space<vmem>>, %arg5: memref<1x16x4x256xf32, #tpu.memory_space<vmem>>) attributes {dimension_semantics = [#tpu.dimension_semantics<parallel>], iteration_bounds = array<i64: 2>, scalar_prefetch = 0 : i64, scratch_operands = 0 : i64, tpu.core_type = #tpu.core_type<tc>, window_params = [{transform_indices = @transform_0, window_bounds = array<i64: 1, 16, 4, 256>}, {pipeline_mode = #tpu.pipeline_mode<synchronous>, transform_indices = @transform_1, window_bounds = array<i64: 16, 1>}, {pipeline_mode = #tpu.pipeline_mode<synchronous>, transform_indices = @transform_2, window_bounds = array<i64: 16, 1>}, {pipeline_mode = #tpu.pipeline_mode<synchronous>, transform_indices = @transform_3, window_bounds = array<i64: 16, 16>}, {transform_indices = @transform_4, window_bounds = array<i64: 1, 16, 4, 256>}]} {
    %c0 = arith.constant 0 : index
    %c0_0 = arith.constant 0 : index
    %c0_1 = arith.constant 0 : index
    %c0_2 = arith.constant 0 : index
    %0 = vector.load %arg1[%c0, %c0_0, %c0_1, %c0_2] : memref<1x16x4x256xf32, #tpu.memory_space<vmem>>, vector<1x16x4x256xf32>
    %1 = vector.shape_cast %0 : vector<1x16x4x256xf32> to vector<16x4x256xf32>
    %cst = arith.constant dense<0.000000e+00> : vector<16x4xf32>
    %2 = vector.multi_reduction <add>, %1, %cst [2] : vector<16x4x256xf32> to vector<16x4xf32>
    %3 = arith.mulf %1, %1 : vector<16x4x256xf32>
    %cst_3 = arith.constant dense<0.000000e+00> : vector<16x4xf32>
    %4 = vector.multi_reduction <add>, %3, %cst_3 [2] : vector<16x4x256xf32> to vector<16x4xf32>
    %c0_4 = arith.constant 0 : index
    %c0_5 = arith.constant 0 : index
    %5 = vector.load %arg4[%c0_4, %c0_5] : memref<16x16xf32, #tpu.memory_space<vmem>>, vector<16x16xf32>
    %cst_6 = arith.constant dense<0.000000e+00> : vector<16x4xf32>
    %6 = tpu.matmul %5, %2, %cst_6 {dimension_numbers = #tpu.dot_dimension_numbers<[1], [0], [0], [1], [0, 0, 1, 1], [], []>} : vector<16x16xf32>, vector<16x4xf32>, vector<16x4xf32> -> vector<16x4xf32>
    %c0_7 = arith.constant 0 : index
    %c0_8 = arith.constant 0 : index
    %7 = vector.load %arg4[%c0_7, %c0_8] : memref<16x16xf32, #tpu.memory_space<vmem>>, vector<16x16xf32>
    %cst_9 = arith.constant dense<0.000000e+00> : vector<16x4xf32>
    %8 = tpu.matmul %7, %4, %cst_9 {dimension_numbers = #tpu.dot_dimension_numbers<[1], [0], [0], [1], [0, 0, 1, 1], [], []>} : vector<16x16xf32>, vector<16x4xf32>, vector<16x4xf32> -> vector<16x4xf32>
    %9 = arith.mulf %6, %6 : vector<16x4xf32>
    %10 = arith.subf %8, %9 : vector<16x4xf32>
    %cst_10 = arith.constant 0.000000e+00 : f32
    %11 = vector.broadcast %cst_10 : f32 to vector<16x4xf32>
    %12 = arith.maximumf %10, %11 : vector<16x4xf32>
    %cst_11 = arith.constant 9.99999974E-6 : f32
    %13 = vector.broadcast %cst_11 : f32 to vector<16x4xf32>
    %14 = arith.addf %12, %13 : vector<16x4xf32>
    %15 = math.rsqrt %14 : vector<16x4xf32>
    %c0_12 = arith.constant 0 : index
    %c0_13 = arith.constant 0 : index
    %16 = vector.load %arg2[%c0_12, %c0_13] : memref<16x1xf32, #tpu.memory_space<vmem>>, vector<16x1xf32>
    %17 = vector.broadcast %16 : vector<16x1xf32> to vector<16x4xf32>
    %18 = arith.mulf %15, %17 : vector<16x4xf32>
    %c0_14 = arith.constant 0 : index
    %c0_15 = arith.constant 0 : index
    %19 = vector.load %arg3[%c0_14, %c0_15] : memref<16x1xf32, #tpu.memory_space<vmem>>, vector<16x1xf32>
    %20 = arith.mulf %6, %18 : vector<16x4xf32>
    %21 = vector.broadcast %19 : vector<16x1xf32> to vector<16x4xf32>
    %22 = arith.subf %21, %20 : vector<16x4xf32>
    %23 = vector.shape_cast %18 : vector<16x4xf32> to vector<16x4x1xf32>
    %24 = vector.broadcast %23 : vector<16x4x1xf32> to vector<16x4x256xf32>
    %25 = arith.mulf %1, %24 : vector<16x4x256xf32>
    %26 = vector.shape_cast %22 : vector<16x4xf32> to vector<16x4x1xf32>
    %27 = vector.broadcast %26 : vector<16x4x1xf32> to vector<16x4x256xf32>
    %28 = arith.addf %25, %27 : vector<16x4x256xf32>
    %c0_16 = arith.constant 0 : index
    %c0_17 = arith.constant 0 : index
    %c0_18 = arith.constant 0 : index
    %c0_19 = arith.constant 0 : index
    %29 = vector.load %arg5[%c0_16, %c0_17, %c0_18, %c0_19] : memref<1x16x4x256xf32, #tpu.memory_space<vmem>>, vector<1x16x4x256xf32>
    %30 = vector.shape_cast %29 : vector<1x16x4x256xf32> to vector<16x4x256xf32>
    %31 = vector.shape_cast %28 : vector<16x4x256xf32> to vector<1x16x4x256xf32>
    tpu.vector_store %arg5[%c0_16, %c0_17, %c0_18, %c0_19], %31 {strides = array<i32>} : memref<1x16x4x256xf32, #tpu.memory_space<vmem>>, vector<1x16x4x256xf32>,
    return
  }
  func.func @transform_0(%arg0: i32) -> (i32, i32, i32, i32) {
    %c0_i32 = arith.constant 0 : i32
    %c0_i32_0 = arith.constant 0 : i32
    %c0_i32_1 = arith.constant 0 : i32
    %c0_i32_2 = arith.constant 0 : i32
    return %arg0, %c0_i32, %c0_i32_0, %c0_i32_1 : i32, i32, i32, i32
  }
  func.func @transform_1(%arg0: i32) -> (i32, i32) {
    %c0_i32 = arith.constant 0 : i32
    %c0_i32_0 = arith.constant 0 : i32
    %c0_i32_1 = arith.constant 0 : i32
    return %c0_i32, %c0_i32_0 : i32, i32
  }
  func.func @transform_2(%arg0: i32) -> (i32, i32) {
    %c0_i32 = arith.constant 0 : i32
    %c0_i32_0 = arith.constant 0 : i32
    %c0_i32_1 = arith.constant 0 : i32
    return %c0_i32, %c0_i32_0 : i32, i32
  }
  func.func @transform_3(%arg0: i32) -> (i32, i32) {
    %c0_i32 = arith.constant 0 : i32
    %c0_i32_0 = arith.constant 0 : i32
    %c0_i32_1 = arith.constant 0 : i32
    return %c0_i32, %c0_i32_0 : i32, i32
  }
  func.func @transform_4(%arg0: i32) -> (i32, i32, i32, i32) {
    %c0_i32 = arith.constant 0 : i32
    %c0_i32_0 = arith.constant 0 : i32
    %c0_i32_1 = arith.constant 0 : i32
    %c0_i32_2 = arith.constant 0 : i32
    return %arg0, %c0_i32, %c0_i32_0, %c0_i32_1 : i32, i32, i32, i32
  }
}

</mosaic_0001>

<bundles_post_ra>
// kernel: spectral_normalize.1
= control target key start
LH: loop header
LB: loop body
LE: loop exit
PB: predicated region body
PF: predicated region fallthrough
CT: control target
= control target key end

     0   :  { %s1616_s15 = smov 0   ;;  %s2055_s0 = inlined_call_operand.vmem [shape: f32[2,16,4,256], index: 0, kind: input, shape index: {}]   ;;  %s2056_s1 = inlined_call_operand.vmem [shape: f32[16,1], index: 1, kind: input, shape index: {}]   ;;  %s2057_s2 = inlined_call_operand.vmem [shape: f32[16,1], index: 2, kind: input, shape index: {}]   ;;  %s2058_s3 = inlined_call_operand.vmem [shape: f32[16,16], index: 3, kind: input, shape index: {}]   ;;  %s2059_s4 = inlined_call_operand.vmem [shape: f32[2,16,4,256], index: 4, kind: output, shape index: {}]  }
   0x1 LB: > { %s1502_s16 = sadd.s32 4294967295, %s1587_s15   ;;  %p1506_p0 = scmp.ge.s32.totalorder %s1587_s15, 1  ;;  %s1587_s15 = sphi %s1616_s15, %s14_s15  }
   0x2   : > { %p162_p1 = scmp.lt.s32.totalorder %s1587_s15, 3 }
   0x4   : > { %p163_p2 = pnand %p1506_p0, %p162_p1 }
   0x5   : > { %p188_p3 = scmp.lt.s32.totalorder (!%p163_p2), %s1502_s16, 1  ;;  %vm262_vm0 = vcmask (!%p163_p2), 1043456   ;;  %vm594_vm1 = vcmask (!%p163_p2), 130048   ;;  %vm571_vm2 = vcmask (!%p163_p2), 1041409   ;;  %vm573_vm3 = vcmask (!%p163_p2), 1042434  }
   0x6   : > { %166 = sbr.rel (%p163_p2) target bundleno = 655 (0x28f), region = 36  ;;  %vm575_vm4 = vcmask (!%p163_p2), 1043459   ;;  %vm577_vm5 = vcmask (!%p163_p2), 1044484   ;;  %vm579_vm6 = vcmask (!%p163_p2), 1045509   ;;  %vm581_vm7 = vcmask (!%p163_p2), 1046534  }
   0x7   : > { %vm583_vm8 = vcmask (!%p163_p2), 1047559  }
   0xd   : > { %s2061_s16 = smov (!%p188_p3, %s1502_s16), 1 }
   0xe   : > { %s1517_s17 = sshll.u32 %s2061_s16, 7 }
   0xf   : > { %s1632_s20 = scalar_lea.vmem %s2055_s0, %s1517_s17  ;;  %s1979_s9 = scalar_lea.vmem %s2059_s4, %s1517_s17 }
  0x10   : > { %v1635_v0 = vld [vmem:[%s1632_s20 + $0x40] sm:$0xff]  ;;  %v1641_v2 = vld [vmem:[%s1632_s20 + $0x48] sm:$0xff]  ;;  %v1655_v8 = vld [vmem:[%s1632_s20 + $0x50] sm:$0xff] }
  0x11   : > { %v1638_v1 = vld [vmem:[%s1632_s20] sm:$0xff]  ;;  %v238_v3 = vcombine.high %v1635_v0, %v1635_v0  ;;  %v303_v4 = vsel %vm262_vm0, %v1635_v0, 0.0  ;;  %v1652_v7 = vld [vmem:[%s1632_s20 + $0x8] sm:$0xff]  ;;  %v239_v9 = vcombine.high %v1641_v2, %v1641_v2  ;;  %v308_v10 = vsel %vm262_vm0, %v1641_v2, 0.0  ;;  %v1664_v12 = vld [vmem:[%s1632_s20 + $0x10] sm:$0xff] }
  0x12   : > { %v230_v5 = vcombine.high %v1638_v1, %v1638_v1  ;;  %v263_v6 = vsel %vm262_vm0, %v1638_v1, 0.0  ;;  %v231_v11 = vcombine.high %v1652_v7, %v1652_v7  ;;  %v268_v15 = vsel %vm262_vm0, %v1652_v7, 0.0  ;;  %v1673_v17 = vld [vmem:[%s1632_s20 + $0x58] sm:$0xff]  ;;  %v1708_v48 = vld [vmem:[%s1632_s20 + $0x60] sm:$0xff] }
  0x13   : > { %v304_v13 = vsel %vm262_vm0, %v238_v3, 0.0  ;;  %v240_v16 = vcombine.high %v1655_v8, %v1655_v8  ;;  %v309_v20 = vsel %vm262_vm0, %v239_v9, 0.0  ;;  %v1678_v22 = vld [vmem:[%s1632_s20 + $0x18] sm:$0xff]  ;;  %v313_v23 = vsel %vm262_vm0, %v1655_v8, 0.0  ;;  %v1714_v53 = vld [vmem:[%s1632_s20 + $0x20] sm:$0xff] }
  0x14   : > { %v264_v14 = vsel %vm262_vm0, %v230_v5, 0.0  ;;  %v305_v18 = vadd.f32 %v304_v13, %v303_v4  ;;  %v269_v21 = vsel %vm262_vm0, %v231_v11, 0.0  ;;  %v232_v24 = vcombine.high %v1664_v12, %v1664_v12 }
  0x15   : > { %v265_v19 = vadd.f32 %v264_v14, %v263_v6  ;;  %v310_v25 = vadd.f32 %v309_v20, %v308_v10  ;;  %v270_v26 = vadd.f32 %v269_v21, %v268_v15  ;;  %v314_v27 = vsel %vm262_vm0, %v240_v16, 0.0  ;;  %v1732_v10 = vld [vmem:[%s1632_s20 + $0x68] sm:$0xff] }
  0x16   : > { %306 = vadd.xlane.f32.xlu1 %v305_v18  ;;  %v241_v28 = vcombine.high %v1673_v17, %v1673_v17  ;;  %v273_v29 = vsel %vm262_vm0, %v1664_v12, 0.0  ;;  %v274_v30 = vsel %vm262_vm0, %v232_v24, 0.0  ;;  %v233_v31 = vcombine.high %v1678_v22, %v1678_v22  ;;  %v1738_v15 = vld [vmem:[%s1632_s20 + $0x28] sm:$0xff] }
  0x17   : > { %266 = vadd.xlane.f32.xlu0 %v265_v19  ;;  %v344_v32 = vmul.f32 %v1652_v7, %v1652_v7  ;;  %v343_v33 = vmul.f32 %v1638_v1, %v1638_v1  ;;  %v315_v34 = vadd.f32 %v314_v27, %v313_v23  ;;  %v318_v35 = vsel %vm262_vm0, %v1673_v17, 0.0 }
  0x18   : > { %v275_v36 = vadd.f32 %v274_v30, %v273_v29  ;;  %v319_v37 = vsel %vm262_vm0, %v241_v28, 0.0  ;;  %v278_v38 = vsel %vm262_vm0, %v1678_v22, 0.0  ;;  %v352_v39 = vmul.f32 %v1641_v2, %v1641_v2 }
  0x19   : > { %v279_v40 = vsel %vm262_vm0, %v233_v31, 0.0  ;;  %v376_v41 = vcombine.high %v344_v32, %v344_v32  ;;  %v375_v42 = vcombine.high %v343_v33, %v343_v33  ;;  %v351_v43 = vmul.f32 %v1635_v0, %v1635_v0 }
  0x1a   : > { %311 = vadd.xlane.f32.xlu1 %v310_v25  ;;  %v320_v44 = vadd.f32 %v319_v37, %v318_v35  ;;  %v280_v45 = vadd.f32 %v279_v40, %v278_v38  ;;  %v412_v46 = vsel %vm262_vm0, %v344_v32, 0.0  ;;  %v384_v47 = vcombine.high %v352_v39, %v352_v39  ;;  %v1756_v32 = vld [vmem:[%s1632_s20 + $0x70] sm:$0xff] }
  0x1b   : > { %271 = vadd.xlane.f32.xlu0 %v270_v26  ;;  %v413_v49 = vsel %vm262_vm0, %v376_v41, 0.0  ;;  %v407_v50 = vsel %vm262_vm0, %v343_v33, 0.0  ;;  %v408_v51 = vsel %vm262_vm0, %v375_v42, 0.0  ;;  %v383_v52 = vcombine.high %v351_v43, %v351_v43  ;;  %v1762_v37 = vld [vmem:[%s1632_s20 + $0x30] sm:$0xff] }
  0x1c   : > { %v452_v54 = vsel %vm262_vm0, %v352_v39, 0.0  ;;  %v242_v55 = vcombine.high %v1708_v48, %v1708_v48  ;;  %v414_v56 = vadd.f32 %v413_v49, %v412_v46  ;;  %v409_v57 = vadd.f32 %v408_v51, %v407_v50 }
  0x1d   : > { %v453_v58 = vsel %vm262_vm0, %v384_v47, 0.0  ;;  %v353_v59 = vmul.f32 %v1655_v8, %v1655_v8  ;;  %v447_v60 = vsel %vm262_vm0, %v351_v43, 0.0  ;;  %v448_v61 = vsel %vm262_vm0, %v383_v52, 0.0 }
  0x1e   : > { %316 = vadd.xlane.f32.xlu1 %v315_v34  ;;  %v234_v62 = vcombine.high %v1714_v53, %v1714_v53  ;;  %v345_v63 = vmul.f32 %v1664_v12, %v1664_v12  ;;  %v323_v3 = vsel %vm262_vm0, %v1708_v48, 0.0  ;;  %v454_v4 = vadd.f32 %v453_v58, %v452_v54  ;;  %v1783_v58 = vld [vmem:[%s1632_s20 + $0x78] sm:$0xff] }
  0x1f   : > { %276 = vadd.xlane.f32.xlu0 %v275_v36  ;;  %v449_v5 = vadd.f32 %v448_v61, %v447_v60  ;;  %v324_v6 = vsel %vm262_vm0, %v242_v55, 0.0  ;;  %v385_v9 = vcombine.high %v353_v59, %v353_v59  ;;  %v283_v11 = vsel %vm262_vm0, %v1714_v53, 0.0 }
  0x20   : > { %v284_v13 = vsel %vm262_vm0, %v234_v62, 0.0  ;;  %v377_v14 = vcombine.high %v345_v63, %v345_v63  ;;  %v325_v16 = vadd.f32 %v324_v6, %v323_v3  ;;  %v243_v18 = vcombine.high %v1732_v10, %v1732_v10 }
  0x21   : > { %v285_v19 = vadd.f32 %v284_v13, %v283_v11  ;;  %v457_v20 = vsel %vm262_vm0, %v353_v59, 0.0  ;;  %v458_v21 = vsel %vm262_vm0, %v385_v9, 0.0  ;;  %v417_v23 = vsel %vm262_vm0, %v345_v63, 0.0  ;;  %v1786_v59 = vld [vmem:[%s1632_s20 + $0x38] sm:$0xff] }
  0x22   : > { %321 = vadd.xlane.f32.xlu1 %v320_v44  ;;  %v418_v24 = vsel %vm262_vm0, %v377_v14, 0.0  ;;  %v235_v25 = vcombine.high %v1738_v15, %v1738_v15  ;;  %v354_v26 = vmul.f32 %v1673_v17, %v1673_v17  ;;  %v346_v27 = vmul.f32 %v1678_v22, %v1678_v22 }
  0x23   : > { %281 = vadd.xlane.f32.xlu0 %v280_v45  ;;  %v459_v28 = vadd.f32 %v458_v21, %v457_v20  ;;  %v419_v29 = vadd.f32 %v418_v24, %v417_v23  ;;  %v328_v30 = vsel %vm262_vm0, %v1732_v10, 0.0  ;;  %v329_v31 = vsel %vm262_vm0, %v243_v18, 0.0 }
  0x24   : > { %v288_v33 = vsel %vm262_vm0, %v1738_v15, 0.0  ;;  %v289_v34 = vsel %vm262_vm0, %v235_v25, 0.0  ;;  %v386_v35 = vcombine.high %v354_v26, %v354_v26  ;;  %v378_v36 = vcombine.high %v346_v27, %v346_v27 }
  0x25   : > { %v330_v38 = vadd.f32 %v329_v31, %v328_v30  ;;  %v244_v39 = vcombine.high %v1756_v32, %v1756_v32  ;;  %v290_v40 = vadd.f32 %v289_v34, %v288_v33  ;;  %v462_v41 = vsel %vm262_vm0, %v354_v26, 0.0 }
  0x26   : > { %415 = vadd.xlane.f32.xlu1 %v414_v56  ;;  %v236_v42 = vcombine.high %v1762_v37, %v1762_v37  ;;  %v355_v43 = vmul.f32 %v1708_v48, %v1708_v48  ;;  %v463_v44 = vsel %vm262_vm0, %v386_v35, 0.0  ;;  %v422_v45 = vsel %vm262_vm0, %v346_v27, 0.0 }
  0x27   : > { %410 = vadd.xlane.f32.xlu0 %v409_v57  ;;  %v423_v46 = vsel %vm262_vm0, %v378_v36, 0.0  ;;  %v347_v47 = vmul.f32 %v1714_v53, %v1714_v53  ;;  %v333_v49 = vsel %vm262_vm0, %v1756_v32, 0.0  ;;  %v334_v50 = vsel %vm262_vm0, %v244_v39, 0.0 }
  0x28   : > { %v293_v51 = vsel %vm262_vm0, %v1762_v37, 0.0  ;;  %v464_v52 = vadd.f32 %v463_v44, %v462_v41  ;;  %v424_v54 = vadd.f32 %v423_v46, %v422_v45  ;;  %v294_v55 = vsel %vm262_vm0, %v236_v42, 0.0 }
  0x29   : > { %v387_v56 = vcombine.high %v355_v43, %v355_v43  ;;  %v379_v57 = vcombine.high %v347_v47, %v347_v47  ;;  %v335_v60 = vadd.f32 %v334_v50, %v333_v49  ;;  %v295_v61 = vadd.f32 %v294_v55, %v293_v51 }
  0x2a   : > { %455 = vadd.xlane.f32.xlu1 %v454_v4  ;;  %v467_v62 = vsel %vm262_vm0, %v355_v43, 0.0  ;;  %v245_v3 = vcombine.high %v1783_v58, %v1783_v58  ;;  %v237_v4 = vcombine.high %v1786_v59, %v1786_v59  ;;  %v427_v6 = vsel %vm262_vm0, %v347_v47, 0.0 }
  0x2b   : > { %450 = vadd.xlane.f32.xlu0 %v449_v5  ;;  %v468_v63 = vsel %vm262_vm0, %v387_v56, 0.0  ;;  %v356_v5 = vmul.f32 %v1732_v10, %v1732_v10  ;;  %v428_v9 = vsel %vm262_vm0, %v379_v57, 0.0  ;;  %v348_v11 = vmul.f32 %v1738_v15, %v1738_v15  ;;  %v487_v56 = vld [vmem:[%s2058_s3] sm:$0xff]  ;;  %v858_v57 = vld [vmem:[%s2056_s1 + $0x8] sm:$0xff] }
  0x2c   : > { %v469_v13 = vadd.f32 %v468_v63, %v467_v62  ;;  %v338_v14 = vsel %vm262_vm0, %v1783_v58, 0.0  ;;  %v429_v18 = vadd.f32 %v428_v9, %v427_v6  ;;  %v299_v20 = vsel %vm262_vm0, %v237_v4, 0.0  ;;  %1531 = vmatprep.mubr.msk.f32.mxu0 %vm594_vm1, %v487_v56  ;;  %1538 = vmatprep.mubr.msk.f32.mxu1 %vm594_vm1, %v487_v56  ;;  %v871_v62 = vld [vmem:[%s2057_s2] sm:$0xff]  ;;  %v872_v63 = vld [vmem:[%s2057_s2 + $0x8] sm:$0xff] }
  0x2d   : > { %v388_v21 = vcombine.high %v356_v5, %v356_v5  ;;  %v380_v23 = vcombine.high %v348_v11, %v348_v11  ;;  %v357_v24 = vmul.f32 %v1756_v32, %v1756_v32  ;;  %v349_v25 = vmul.f32 %v1762_v37, %v1762_v37 }
  0x2e   : > { %326 = vadd.xlane.f32.xlu1 %v325_v16  ;;  %v298_v16 = vsel %vm262_vm0, %v1786_v59, 0.0  ;;  %v432_v30 = vsel %vm262_vm0, %v348_v11, 0.0  ;;  %v358_v31 = vmul.f32 %v1783_v58, %v1783_v58  ;;  %v350_v36 = vmul.f32 %v1786_v59, %v1786_v59 }
  0x2f   : > { %286 = vadd.xlane.f32.xlu0 %v285_v19  ;;  %v339_v19 = vsel %vm262_vm0, %v245_v3, 0.0  ;;  %v300_v27 = vadd.f32 %v299_v20, %v298_v16  ;;  %v433_v33 = vsel %vm262_vm0, %v380_v23, 0.0  ;;  %v389_v34 = vcombine.high %v357_v24, %v357_v24 }
  0x30   : > { %v340_v26 = vadd.f32 %v339_v19, %v338_v14  ;;  %v381_v35 = vcombine.high %v349_v25, %v349_v25  ;;  %v434_v39 = vadd.f32 %v433_v33, %v432_v30  ;;  %v437_v41 = vsel %vm262_vm0, %v349_v25, 0.0 }
  0x31   : > { %v478_v42 = vsel %vm262_vm0, %v389_v34, 0.0  ;;  %v390_v44 = vcombine.high %v358_v31, %v358_v31  ;;  %v382_v45 = vcombine.high %v350_v36, %v350_v36  ;;  %v482_v49 = vsel %vm262_vm0, %v358_v31, 0.0 }
  0x32   : > { %460 = vadd.xlane.f32.xlu1 %v459_v28  ;;  %v472_v28 = vsel %vm262_vm0, %v356_v5, 0.0  ;;  %v438_v43 = vsel %vm262_vm0, %v381_v35, 0.0  ;;  %v442_v51 = vsel %vm262_vm0, %v350_v36, 0.0 }
  0x33   : > { %420 = vadd.xlane.f32.xlu0 %v419_v29  ;;  %v473_v29 = vsel %vm262_vm0, %v388_v21, 0.0  ;;  %v439_v47 = vadd.f32 %v438_v43, %v437_v41  ;;  %v483_v50 = vsel %vm262_vm0, %v390_v44, 0.0 }
  0x36   : > { %331 = vadd.xlane.f32.xlu1 %v330_v38  ;;  %v474_v38 = vadd.f32 %v473_v29, %v472_v28 }
  0x37   : > { %291 = vadd.xlane.f32.xlu0 %v290_v40  ;;  %v477_v40 = vsel %vm262_vm0, %v357_v24, 0.0 }
  0x38   : > { %v479_v46 = vadd.f32 %v478_v42, %v477_v40 }
  0x3a   : > { %465 = vadd.xlane.f32.xlu1 %v464_v52  ;;  %v443_v52 = vsel %vm262_vm0, %v382_v45, 0.0 }
  0x3b   : > { %425 = vadd.xlane.f32.xlu0 %v424_v54  ;;  %v484_v54 = vadd.f32 %v483_v50, %v482_v49  ;;  %v444_v55 = vadd.f32 %v443_v52, %v442_v51 }
  0x3e   : > { %336 = vadd.xlane.f32.xlu1 %v335_v60  ;;  %v1589_v60 = vmov 0  }
  0x3f   : > { %296 = vadd.xlane.f32.xlu0 %v295_v61  ;;  %1560 = vset.pattern.permute.xlu1 %v1589_v60  ;;  %v857_v61 = vld [vmem:[%s2056_s1] sm:$0xff] }
  0x40   : > { %1559 = vset.pattern.permute.xlu0 %v1589_v60 }
  0x42   : > { %470 = vadd.xlane.f32.xlu1 %v469_v13 }
  0x43   : > { %430 = vadd.xlane.f32.xlu0 %v429_v18 }
  0x46   : > { %341 = vadd.xlane.f32.xlu1 %v340_v26  ;;  %v505_v26 = vlaneseq }
  0x47   : > { %301 = vadd.xlane.f32.xlu0 %v300_v27 }
  0x48   : > { %v506_v29 = vand.u32 127, %v505_v26  ;;  %v1855_v30 = vshrl.u32 %v505_v26, 7 }
  0x4a   : > { %475 = vadd.xlane.f32.xlu1 %v474_v38  ;;  %v1862_v34 = vsub.s32 %v506_v29, %v1855_v30 }
  0x4b   : > { %435 = vadd.xlane.f32.xlu0 %v434_v39 }
  0x4e   : > { %480 = vadd.xlane.f32.xlu1 %v479_v46 }
  0x4f   : > { %440 = vadd.xlane.f32.xlu0 %v439_v47 }
  0x52   : > { %485 = vadd.xlane.f32.xlu1 %v484_v54 }
  0x53   : > { %445 = vadd.xlane.f32.xlu0 %v444_v55 }
  0x63   : > { %866 = vperm.xlu1 %1560, %v858_v57  }
  0x67   : > { %877 = vperm.xlu1 %1560, %v871_v62  }
  0x69   : > { %861 = vperm.xlu0 %1559, %v857_v61  }
  0x6b   : > { %882 = vperm.xlu1 %1560, %v872_v63  }
  0xa3   : > { %v307_v3 = vpop.xlane.xlu1 %306 }
  0xa4   : > { %v267_v4 = vpop.xlane.xlu0 %266  ;;  %v542_v42 = vrot.slane %v307_v3, %v1862_v34 }
  0xa5   : > { %v510_v43 = vrot.slane %v267_v4, %v1862_v34 }
  0xa7   : > { %v312_v5 = vpop.xlane.xlu1 %311 }
  0xa8   : > { %v272_v6 = vpop.xlane.xlu0 %271  ;;  %v546_v38 = vrot.slane %v312_v5, %v1862_v34 }
  0xa9   : > { %v514_v39 = vrot.slane %v272_v6, %v1862_v34 }
  0xaa   : > { %v585_v51 = vsel %vm571_vm2, %v546_v38, %v542_v42 }
  0xab   : > { %v317_v9 = vpop.xlane.xlu1 %316  ;;  %v572_v52 = vsel %vm571_vm2, %v514_v39, %v510_v43 }
  0xac   : > { %v277_v11 = vpop.xlane.xlu0 %276  ;;  %v550_v40 = vrot.slane %v317_v9, %v1862_v34 }
  0xad   : > { %v518_v41 = vrot.slane %v277_v11, %v1862_v34 }
  0xae   : > { %v586_v56 = vsel %vm573_vm3, %v550_v40, %v585_v51 }
  0xaf   : > { %v322_v13 = vpop.xlane.xlu1 %321  ;;  %v574_v57 = vsel %vm573_vm3, %v518_v41, %v572_v52 }
  0xb0   : > { %v282_v14 = vpop.xlane.xlu0 %281  ;;  %v554_v44 = vrot.slane %v322_v13, %v1862_v34 }
  0xb1   : > { %v522_v45 = vrot.slane %v282_v14, %v1862_v34 }
  0xb2   : > { %v587_v62 = vsel %vm575_vm4, %v554_v44, %v586_v56 }
  0xb3   : > { %v1843_v16 = vpop.xlane.xlu1 %415  ;;  %v576_v63 = vsel %vm575_vm4, %v522_v45, %v574_v57 }
  0xb4   : > { %v1845_v18 = vpop.xlane.xlu0 %410 }
  0xb5   : > { %v695_v38 = vrot.slane %v1845_v18, %v1862_v34  ;;  %v488_v18 = vld [vmem:[%s2058_s3 + $0x8] sm:$0xff] }
  0xb7   : > { %v1847_v19 = vpop.xlane.xlu1 %455 }
  0xb8   : > { %v1849_v20 = vpop.xlane.xlu0 %450  ;;  %v731_v39 = vrot.slane %v1847_v19, %v1862_v34 }
  0xb9   : > { %v727_v40 = vrot.slane %v1849_v20, %v1862_v34 }
  0xbb   : > { %v327_v21 = vpop.xlane.xlu1 %326  ;;  %v763_v45 = vsel %vm571_vm2, %v731_v39, %v727_v40  ;;  %v1939_v39 = vsub.s32 0, %v1855_v30 }
  0xbc   : > { %v287_v23 = vpop.xlane.xlu0 %286  ;;  %v558_v46 = vrot.slane %v327_v21, %v1862_v34 }
  0xbd   : > { %v526_v47 = vrot.slane %v287_v23, %v1862_v34 }
  0xbe   : > { %v588_v3 = vsel %vm577_vm5, %v558_v46, %v587_v62 }
  0xbf   : > { %v1851_v24 = vpop.xlane.xlu1 %460  ;;  %v578_v4 = vsel %vm577_vm5, %v526_v47, %v576_v63 }
  0xc0   : > { %v1853_v25 = vpop.xlane.xlu0 %420  ;;  %v735_v41 = vrot.slane %v1851_v24, %v1862_v34 }
  0xc1   : > { %v703_v42 = vrot.slane %v1853_v25, %v1862_v34 }
  0xc3   : > { %v332_v27 = vpop.xlane.xlu1 %331 }
  0xc4   : > { %v292_v28 = vpop.xlane.xlu0 %291  ;;  %v562_v54 = vrot.slane %v332_v27, %v1862_v34 }
  0xc5   : > { %v530_v55 = vrot.slane %v292_v28, %v1862_v34 }
  0xc6   : > { %v589_v9 = vsel %vm579_vm6, %v562_v54, %v588_v3 }
  0xc7   : > { %v1857_v31 = vpop.xlane.xlu1 %465  ;;  %v580_v11 = vsel %vm579_vm6, %v530_v55, %v578_v4 }
  0xc8   : > { %v1859_v33 = vpop.xlane.xlu0 %425  ;;  %v739_v43 = vrot.slane %v1857_v31, %v1862_v34 }
  0xcb   : > { %v337_v35 = vpop.xlane.xlu1 %336 }
  0xcc   : > { %v297_v36 = vpop.xlane.xlu0 %296  ;;  %v566_v60 = vrot.slane %v337_v35, %v1862_v34 }
  0xcd   : > { %v534_v61 = vrot.slane %v297_v36, %v1862_v34  ;;  %v699_v36 = vrot.slane %v1843_v16, %v1862_v34  ;;  %v707_v16 = vrot.slane %v1859_v33, %v1862_v34  ;;  %v764_v33 = vsel %vm573_vm3, %v735_v41, %v763_v45 }
  0xce   : > { %v590_v23 = vsel %vm581_vm7, %v566_v60, %v589_v9 }
  0xcf   : > { %v471_v49 = vpop.xlane.xlu1 %470  ;;  %v582_v21 = vsel %vm581_vm7, %v534_v61, %v580_v11  ;;  %v756_v25 = vsel %vm571_vm2, %v699_v36, %v695_v38  ;;  %v896_v38 = vsub.s32 1, %v1855_v30 }
  0xd0   : > { %v431_v50 = vpop.xlane.xlu0 %430  ;;  %v743_v19 = vrot.slane %v471_v49, %v1862_v34  ;;  %v757_v47 = vsel %vm573_vm3, %v703_v42, %v756_v25 }
  0xd1   : > { %v711_v20 = vrot.slane %v431_v50, %v1862_v34  ;;  %v765_v50 = vsel %vm575_vm4, %v739_v43, %v764_v33  ;;  %v758_v52 = vsel %vm575_vm4, %v707_v16, %v757_v47  ;;  %v917_v33 = vsub.s32 4, %v1855_v30 }
  0xd2   : > { %v766_v54 = vsel %vm577_vm5, %v743_v19, %v765_v50  ;;  %v938_v50 = vsub.s32 7, %v1855_v30 }
  0xd3   : > { %v342_v5 = vpop.xlane.xlu1 %341  ;;  %v759_v55 = vsel %vm577_vm5, %v711_v20, %v758_v52  ;;  %v931_v52 = vsub.s32 6, %v1855_v30 }
  0xd4   : > { %v302_v6 = vpop.xlane.xlu0 %301  ;;  %v570_v13 = vrot.slane %v342_v5, %v1862_v34 }
  0xd5   : > { %v538_v14 = vrot.slane %v302_v6, %v1862_v34 }
  0xd6   : > { %v591_v27 = vsel %vm583_vm8, %v570_v13, %v590_v23 }
  0xd7   : > { %v584_v26 = vsel %vm583_vm8, %v538_v14, %v582_v21  ;;  %v476_v28 = vpop.xlane.xlu1 %475 }
  0xd8   : > { %v436_v29 = vpop.xlane.xlu0 %435  ;;  %v1541_v35 = vpack.c.bf16 %v591_v27, %v584_v26  ;;  %v747_v31 = vrot.slane %v476_v28, %v1862_v34 }
  0xd9   : > { %v715_v46 = vrot.slane %v436_v29, %v1862_v34 }
  0xda   : > { %1542 = vmatprep.subr.bf16.mxu0 %v1541_v35  ;;  %v767_v60 = vsel %vm579_vm6, %v747_v31, %v766_v54 }
  0xdb   : > { %1544 = vmatpush3.bf16.msra.mxu0 %v1541_v35  ;;  %v481_v24 = vpop.xlane.xlu1 %480  ;;  %v760_v61 = vsel %vm579_vm6, %v715_v46, %v759_v55  ;;  %v924_v46 = vsub.s32 5, %v1855_v30 }
  0xdc   : > { %v441_v44 = vpop.xlane.xlu0 %440  ;;  %v751_v51 = vrot.slane %v481_v24, %v1862_v34 }
  0xdd   : > { %v719_v49 = vrot.slane %v441_v44, %v1862_v34  ;;  %v1944_v44 = vsub.s32 2, %v1855_v30 }
  0xde   : > { %1532 = vmatmul.mubr.msk.f32.vlgmr.msra.gmra.mrb[0].mxu0 %vm594_vm1, %v488_v18  ;;  %v768_v4 = vsel %vm581_vm7, %v751_v51, %v767_v60 }
  0xdf   : > { %v486_v56 = vpop.xlane.xlu1 %485  ;;  %v761_v3 = vsel %vm581_vm7, %v719_v49, %v760_v61 }
  0xe0   : > { %v446_v57 = vpop.xlane.xlu0 %445  ;;  %v755_v62 = vrot.slane %v486_v56, %v1862_v34 }
  0xe1   : > { %v723_v63 = vrot.slane %v446_v57, %v1862_v34 }
  0xe2   : > { %v769_v6 = vsel %vm583_vm8, %v755_v62, %v768_v4 }
  0xe3   : > { %v762_v5 = vsel %vm583_vm8, %v723_v63, %v761_v3  ;;  %v867_v41 = vpop.permute.xlu1 %866 }
  0xe4   : > { %v1545_v9 = vpack.c.bf16 %v769_v6, %v762_v5 }
  0xe6   : > { %1546 = vmatprep.subr.bf16.mxu1 %v1545_v9 }
  0xe7   : > { %1548 = vmatpush3.bf16.msra.mxu1 %v1545_v9  ;;  %v878_v56 = vpop.permute.xlu1 %877 }
  0xe8   : > { %v862_v16 = vpop.permute.xlu0 %861 }
  0xea   : > { %1539 = vmatmul.mubr.msk.f32.vlgmr.msra.gmra.mrb[0].mxu1 %vm594_vm1, %v488_v18  ;;  %v910_v18 = vsub.s32 3, %v1855_v30 }
  0xeb   : > { %v883_v61 = vpop.permute.xlu1 %882 }
 0x1b1   : > { %v1533_v11 = vpop.f32.mrb[0].mxu0 }
 0x1b2   : > { %v667_v13 = vpop.f32.mrb[1].mxu0  ;;  %v848_v14 = vmul.f32 %v1533_v11, %v1533_v11 }
 0x1b3   : > { %v847_v21 = vmul.f32 %v667_v13, %v667_v13 }
 0x1bd   : > { %v1540_v23 = vpop.f32.mrb[0].mxu1 }
 0x1be   : > { %v850_v26 = vsub.f32 %v1540_v23, %v848_v14  ;;  %v838_v34 = vpop.f32.mrb[1].mxu1 }
 0x1bf   : > { %v849_v27 = vsub.f32 %v838_v34, %v847_v21 }
 0x1c0   : > { %v852_v28 = vmax.f32 %v850_v26, 0.0 }
 0x1c1   : > { %v851_v29 = vmax.f32 %v849_v27, 0.0 }
 0x1c2   : > { %v854_v35 = vadd.f32 1e-05, %v852_v28 }
 0x1c3   : > { %v853_v36 = vadd.f32 1e-05, %v851_v29 }
 0x1c4   : > { %1577 = vrsqrt.f32 %v854_v35 }
 0x1c5   : > { %1579 = vrsqrt.f32 %v853_v36 }
 0x1ce   : > { %v1578_v40 = vpop.eup %1577 }
 0x1cf   : > { %v1580_v42 = vpop.eup %1579  ;;  %v870_v43 = vmul.f32 %v1578_v40, %v867_v41 }
 0x1d0   : > { %v869_v25 = vmul.f32 %v1580_v42, %v862_v16 }
 0x1d1   : > { %v874_v19 = vmul.f32 %v1533_v11, %v870_v43  ;;  %v953_v20 = vrot.slane %v870_v43, %v896_v38  ;;  %v946_v24 = vrot.slane %v870_v43, %v1939_v39  ;;  %v967_v45 = vrot.slane %v870_v43, %v910_v18 }
 0x1d2   : > { %v960_v31 = vrot.slane %v870_v43, %v1944_v44  ;;  %v873_v47 = vmul.f32 %v869_v25, %v667_v13  ;;  %v981_v51 = vrot.slane %v870_v43, %v924_v46  ;;  %v974_v49 = vrot.slane %v870_v43, %v917_v33 }
 0x1d3   : > { %955 = vbcast.lane.b32.xlu0 %v953_v20, 256  ;;  %948 = vbcast.lane.b32.xlu1 %v946_v24, 256  ;;  %v995_v54 = vrot.slane %v870_v43, %v938_v50  ;;  %v988_v55 = vrot.slane %v870_v43, %v931_v52  ;;  %v925_v57 = vrot.slane %v869_v25, %v924_v46 }
 0x1d4   : > { %v890_v60 = vrot.slane %v869_v25, %v1939_v39  ;;  %v886_v62 = vsub.f32 %v883_v61, %v874_v19  ;;  %v939_v63 = vrot.slane %v869_v25, %v938_v50  ;;  %v897_v3 = vrot.slane %v869_v25, %v896_v38 }
 0x1d5   : > { %v904_v5 = vrot.slane %v869_v25, %v1944_v44  ;;  %v911_v9 = vrot.slane %v869_v25, %v910_v18  ;;  %v918_v13 = vrot.slane %v869_v25, %v917_v33  ;;  %v885_v14 = vsub.f32 %v878_v56, %v873_v47 }
 0x1d6   : > { %v1225_v4 = vrot.slane %v886_v62, %v896_v38  ;;  %v1239_v6 = vrot.slane %v886_v62, %v910_v18  ;;  %v1253_v11 = vrot.slane %v886_v62, %v924_v46  ;;  %v932_v21 = vrot.slane %v869_v25, %v931_v52 }
 0x1d7   : > { %969 = vbcast.lane.b32.xlu0 %v967_v45, 256  ;;  %962 = vbcast.lane.b32.xlu1 %v960_v31, 256  ;;  %v1169_v23 = vrot.slane %v885_v14, %v896_v38  ;;  %v1218_v26 = vrot.slane %v886_v62, %v1939_v39  ;;  %v1183_v34 = vrot.slane %v885_v14, %v910_v18  ;;  %v1590_v45 = vmov 839922192  }
 0x1d8   : > { %v1232_v27 = vrot.slane %v886_v62, %v1944_v44  ;;  %v1197_v28 = vrot.slane %v885_v14, %v924_v46  ;;  %v1246_v29 = vrot.slane %v886_v62, %v917_v33  ;;  %v1211_v35 = vrot.slane %v885_v14, %v938_v50 }
 0x1d9   : > { %v1267_v36 = vrot.slane %v886_v62, %v938_v50  ;;  %v1162_v40 = vrot.slane %v885_v14, %v1939_v39  ;;  %v1176_v38 = vrot.slane %v885_v14, %v1944_v44  ;;  %v1190_v41 = vrot.slane %v885_v14, %v917_v33 }
 0x1da   : > { %v1204_v42 = vrot.slane %v885_v14, %v931_v52  ;;  %v1260_v43 = vrot.slane %v886_v62, %v931_v52  ;;  %v1016_v39 = vunpack.c.l.s4 %v1590_v45 }
 0x1db   : > { %983 = vbcast.lane.b32.xlu0 %v981_v51, 256  ;;  %976 = vbcast.lane.b32.xlu1 %v974_v49, 256 }
 0x1dc   : > { %v1017_v46 = vunpack.c.0.s8 %v1016_v39 }
 0x1de   : > { %v1966_v51 = vsub.s32 %v1017_v46, %v1855_v30 }
 0x1df   : > { %997 = vbcast.lane.b32.xlu0 %v995_v54, 256  ;;  %990 = vbcast.lane.b32.xlu1 %v988_v55, 256 }
 0x1e3   : > { %927 = vbcast.lane.b32.xlu0 %v925_v57, 256  ;;  %892 = vbcast.lane.b32.xlu1 %v890_v60, 256 }
 0x1e7   : > { %941 = vbcast.lane.b32.xlu0 %v939_v63, 256  ;;  %899 = vbcast.lane.b32.xlu1 %v897_v3, 256 }
 0x1eb   : > { %1227 = vbcast.lane.b32.xlu0 %v1225_v4, 256  ;;  %906 = vbcast.lane.b32.xlu1 %v904_v5, 256 }
 0x1ef   : > { %1241 = vbcast.lane.b32.xlu0 %v1239_v6, 256  ;;  %913 = vbcast.lane.b32.xlu1 %v911_v9, 256 }
 0x1f3   : > { %1255 = vbcast.lane.b32.xlu0 %v1253_v11, 256  ;;  %920 = vbcast.lane.b32.xlu1 %v918_v13, 256 }
 0x1f7   : > { %934 = vbcast.lane.b32.xlu1 %v932_v21, 256  ;;  %1171 = vbcast.lane.b32.xlu0 %v1169_v23, 256 }
 0x1fb   : > { %1220 = vbcast.lane.b32.xlu1 %v1218_v26, 256  ;;  %1185 = vbcast.lane.b32.xlu0 %v1183_v34, 256 }
 0x1ff   : > { %1234 = vbcast.lane.b32.xlu1 %v1232_v27, 256  ;;  %1199 = vbcast.lane.b32.xlu0 %v1197_v28, 256 }
 0x203   : > { %1248 = vbcast.lane.b32.xlu1 %v1246_v29, 256  ;;  %1213 = vbcast.lane.b32.xlu0 %v1211_v35, 256 }
 0x207   : > { %1269 = vbcast.lane.b32.xlu0 %v1267_v36, 256  ;;  %1164 = vbcast.lane.b32.xlu1 %v1162_v40, 256 }
 0x20b   : > { %1178 = vbcast.lane.b32.xlu1 %v1176_v38, 256 }
 0x20f   : > { %1192 = vbcast.lane.b32.xlu1 %v1190_v41, 256 }
 0x213   : > { %1206 = vbcast.lane.b32.xlu1 %v1204_v42, 256 }
 0x217   : > { %1262 = vbcast.lane.b32.xlu1 %v1260_v43, 256 }
 0x245   : > { %v949_v16 = vpop.permute.xlu1 %948  ;;  %v956_v18 = vpop.permute.xlu0 %955 }
 0x246   : > { %v1084_v52 = vrot.slane %v956_v18, %v1966_v51 }
 0x248   : > { %v1152_v56 = vmul.f32 %v1084_v52, %v1641_v2 }
 0x249   : > { %v963_v19 = vpop.permute.xlu1 %962  ;;  %v970_v20 = vpop.permute.xlu0 %969 }
 0x24a   : > { %v1098_v57 = vrot.slane %v970_v20, %v1966_v51  ;;  %v1091_v29 = vrot.slane %v963_v19, %v1966_v51 }
 0x24c   : > { %v1154_v63 = vmul.f32 %v1098_v57, %v1673_v17  ;;  %v1077_v17 = vrot.slane %v949_v16, %v1966_v51  ;;  %v1153_v16 = vmul.f32 %v1091_v29, %v1655_v8 }
 0x24d   : > { %v1957_v24 = vpop.permute.xlu1 %976  ;;  %v984_v25 = vpop.permute.xlu0 %983 }
 0x24e   : > { %v1112_v3 = vrot.slane %v984_v25, %v1966_v51  ;;  %v1151_v28 = vmul.f32 %v1077_v17, %v1635_v0  ;;  %v1105_v0 = vrot.slane %v1957_v24, %v1966_v51 }
 0x250   : > { %v1156_v9 = vmul.f32 %v1112_v3, %v1732_v10  ;;  %v1155_v8 = vmul.f32 %v1105_v0, %v1708_v48 }
 0x251   : > { %v1959_v31 = vpop.permute.xlu1 %990  ;;  %v1961_v44 = vpop.permute.xlu0 %997 }
 0x252   : > { %v1126_v24 = vrot.slane %v1961_v44, %v1966_v51 }
 0x254   : > { %v1158_v44 = vmul.f32 %v1126_v24, %v1783_v58 }
 0x255   : > { %v1963_v33 = vpop.permute.xlu1 %892  ;;  %v928_v47 = vpop.permute.xlu0 %927 }
 0x256   : > { %v1056_v40 = vrot.slane %v928_v47, %v1966_v51 }
 0x258   : > { %v1148_v20 = vmul.f32 %v1056_v40, %v1738_v15  ;;  %v1021_v15 = vrot.slane %v1963_v33, %v1966_v51 }
 0x259   : > { %v900_v49 = vpop.permute.xlu1 %899  ;;  %v942_v50 = vpop.permute.xlu0 %941 }
 0x25a   : > { %v1028_v11 = vrot.slane %v900_v49, %v1966_v51 }
 0x25c   : > { %v1144_v26 = vmul.f32 %v1028_v11, %v1652_v7 }
 0x25d   : > { %v1969_v54 = vpop.permute.xlu1 %906  ;;  %v1228_v55 = vpop.permute.xlu0 %1227 }
 0x25e   : > { %v1356_v60 = vrot.slane %v1228_v55, %v1966_v51  ;;  %v1035_v33 = vrot.slane %v1969_v54, %v1966_v51 }
 0x260   : > { %v1424_v30 = vadd.f32 %v1356_v60, %v1152_v56  ;;  %v1145_v58 = vmul.f32 %v1035_v33, %v1664_v12 }
 0x261   : > { %v914_v61 = vpop.permute.xlu1 %913  ;;  %v1242_v62 = vpop.permute.xlu0 %1241 }
 0x262   : > { %1440 = vst [vmem:[%s1979_s9 + $0x48] sm:$0xff] %v1424_v30  ;;  %v1370_v2 = vrot.slane %v1242_v62, %v1966_v51  ;;  %v1042_v34 = vrot.slane %v914_v61, %v1966_v51  ;;  %v1143_v30 = vmul.f32 %v1021_v15, %v1638_v1 }
 0x264   : > { %v1426_v4 = vadd.f32 %v1370_v2, %v1154_v63  ;;  %v1146_v38 = vmul.f32 %v1042_v34, %v1678_v22  ;;  %v1070_v22 = vrot.slane %v942_v50, %v1966_v51 }
 0x265   : > { %v1985_v5 = vpop.permute.xlu1 %920  ;;  %v1256_v6 = vpop.permute.xlu0 %1255 }
 0x266   : > { %1442 = vst [vmem:[%s1979_s9 + $0x58] sm:$0xff] %v1426_v4  ;;  %v1384_v13 = vrot.slane %v1256_v6, %v1966_v51  ;;  %v1150_v50 = vmul.f32 %v1070_v22, %v1786_v59  ;;  %v1049_v2 = vrot.slane %v1985_v5, %v1966_v51  ;;  %v1119_v5 = vrot.slane %v1959_v31, %v1966_v51 }
 0x268   : > { %v1428_v14 = vadd.f32 %v1384_v13, %v1156_v9  ;;  %v1147_v6 = vmul.f32 %v1049_v2, %v1714_v53  ;;  %v1157_v53 = vmul.f32 %v1119_v5, %v1756_v32 }
 0x269   : > { %v1992_v21 = vpop.permute.xlu1 %934  ;;  %v1172_v23 = vpop.permute.xlu0 %1171 }
 0x26a   : > { %1444 = vst [vmem:[%s1979_s9 + $0x68] sm:$0xff] %v1428_v14  ;;  %v1300_v27 = vrot.slane %v1172_v23, %v1966_v51  ;;  %v1063_v9 = vrot.slane %v1992_v21, %v1966_v51 }
 0x26c   : > { %v1416_v10 = vadd.f32 %v1300_v27, %v1144_v26  ;;  %v1149_v14 = vmul.f32 %v1063_v9, %v1762_v37 }
 0x26d   : > { %v1221_v35 = vpop.permute.xlu1 %1220  ;;  %v1186_v36 = vpop.permute.xlu0 %1185 }
 0x26e   : > { %1432 = vst [vmem:[%s1979_s9 + $0x8] sm:$0xff] %v1416_v10  ;;  %v1349_v7 = vrot.slane %v1221_v35, %v1966_v51  ;;  %v1314_v41 = vrot.slane %v1186_v36, %v1966_v51 }
 0x270   : > { %v1423_v42 = vadd.f32 %v1349_v7, %v1151_v28  ;;  %v1418_v43 = vadd.f32 %v1314_v41, %v1146_v38 }
 0x271   : > { %v1235_v18 = vpop.permute.xlu1 %1234  ;;  %v1200_v19 = vpop.permute.xlu0 %1199 }
 0x272   : > { %1439 = vst [vmem:[%s1979_s9 + $0x40] sm:$0xff] %v1423_v42  ;;  %1434 = vst [vmem:[%s1979_s9 + $0x18] sm:$0xff] %v1418_v43  ;;  %v1363_v25 = vrot.slane %v1235_v18, %v1966_v51  ;;  %v1328_v45 = vrot.slane %v1200_v19, %v1966_v51 }
 0x274   : > { %v1425_v39 = vadd.f32 %v1363_v25, %v1153_v16  ;;  %v1420_v46 = vadd.f32 %v1328_v45, %v1148_v20 }
 0x275   : > { %v1249_v47 = vpop.permute.xlu1 %1248  ;;  %v1214_v49 = vpop.permute.xlu0 %1213 }
 0x276   : > { %1441 = vst [vmem:[%s1979_s9 + $0x50] sm:$0xff] %v1425_v39  ;;  %1436 = vst [vmem:[%s1979_s9 + $0x28] sm:$0xff] %v1420_v46  ;;  %v1377_v52 = vrot.slane %v1249_v47, %v1966_v51  ;;  %v1342_v55 = vrot.slane %v1214_v49, %v1966_v51 }
 0x278   : > { %v1427_v56 = vadd.f32 %v1377_v52, %v1155_v8  ;;  %v1422_v48 = vadd.f32 %v1342_v55, %v1150_v50 }
 0x279   : > { %v1165_v57 = vpop.permute.xlu1 %1164  ;;  %v1270_v60 = vpop.permute.xlu0 %1269 }
 0x27a   : > { %1443 = vst [vmem:[%s1979_s9 + $0x60] sm:$0xff] %v1427_v56  ;;  %1438 = vst [vmem:[%s1979_s9 + $0x38] sm:$0xff] %v1422_v48  ;;  %v1293_v59 = vrot.slane %v1165_v57, %v1966_v51  ;;  %v1398_v61 = vrot.slane %v1270_v60, %v1966_v51 }
 0x27c   : > { %v1415_v62 = vadd.f32 %v1293_v59, %v1143_v30  ;;  %v1430_v63 = vadd.f32 %v1398_v61, %v1158_v44 }
 0x27d   : > { %v1179_v3 = vpop.permute.xlu1 %1178 }
 0x27e   : > { %1431 = vst [vmem:[%s1979_s9] sm:$0xff] %v1415_v62  ;;  %1446 = vst [vmem:[%s1979_s9 + $0x78] sm:$0xff] %v1430_v63  ;;  %v1307_v1 = vrot.slane %v1179_v3, %v1966_v51 }
 0x280   : > { %v1417_v54 = vadd.f32 %v1307_v1, %v1145_v58 }
 0x281   : > { %v1193_v4 = vpop.permute.xlu1 %1192 }
 0x282   : > { %1433 = vst [vmem:[%s1979_s9 + $0x10] sm:$0xff] %v1417_v54  ;;  %v1321_v11 = vrot.slane %v1193_v4, %v1966_v51 }
 0x284   : > { %v1419_v12 = vadd.f32 %v1321_v11, %v1147_v6 }
 0x285   : > { %v1207_v13 = vpop.permute.xlu1 %1206 }
 0x286   : > { %1435 = vst [vmem:[%s1979_s9 + $0x20] sm:$0xff] %v1419_v12  ;;  %v1335_v17 = vrot.slane %v1207_v13, %v1966_v51 }
 0x288   : > { %v1421_v23 = vadd.f32 %v1335_v17, %v1149_v14 }
 0x289   : > { %v1263_v26 = vpop.permute.xlu1 %1262 }
 0x28a   : > { %1437 = vst [vmem:[%s1979_s9 + $0x30] sm:$0xff] %v1421_v23  ;;  %v1391_v21 = vrot.slane %v1263_v26, %v1966_v51 }
 0x28c   : > { %v1429_v34 = vadd.f32 %v1391_v21, %v1157_v53 }
 0x28e   : > { %1445 = vst [vmem:[%s1979_s9 + $0x70] sm:$0xff] %v1429_v34 }
 0x28f PF: > { %s14_s15 = sadd.s32 1, %s1587_s15  }
 0x290   : > { %p11_p4 = scmp.ge.s32.totalorder %s14_s15, 4  }
 0x292   :  { %13 = sbr.rel (!%p11_p4) target bundleno = 1 (0x1), region = 66 }

</bundles_post_ra>
